<compile_context>
chip_gen: v7x
topology: tpu7x:2x2x1
jax: 0.10.0
libtpu: 0.0.40
codegen_flags: <defaults>
</compile_context>

<pallas_src>
import functools

import jax
import jax.numpy as jnp
from jax.experimental import pallas as pl
from jax.experimental.pallas import tpu as pltpu


def _round_up(x, m):
    return ((x + m - 1) // m) * m


def _colmean(x, ones_scaled, inv_n):
    """Per-feature mean over the batch axis of an (N, T) f32 block -> (1, T)."""
    if ones_scaled is not None:
        # Large N: offload to the otherwise-idle MXU; 1/N is already folded
        # into the ones row so the matmul directly produces the mean.
        return jnp.dot(ones_scaled, x, preferred_element_type=jnp.float32)
    # Small/medium N: sublane reduce on the VPU.
    return jnp.sum(x, axis=0, keepdims=True) * inv_n


def _fold_lanes(v, fold_w):
    """(1, T) -> (1, fold_w) by summing 128-aligned lane groups (vreg adds)."""
    t = v.shape[-1]
    out = v[:, :fold_w]
    for g in range(1, t // fold_w):
        out = out + v[:, g * fold_w:(g + 1) * fold_w]
    return out


def _cmd_kernel(x1_ref, x2_ref, o_ref, acc_ref, *, n_moments, inv_n1, inv_n2,
                use_mxu_1, use_mxu_2, tile, fold_w, spc, d_valid, mask_last):
    i = pl.program_id(1)

    @pl.when(i == 0)
    def _():
        acc_ref[...] = jnp.zeros_like(acc_ref)

    x1 = x1_ref[...].astype(jnp.float32)   # (N1, tile)
    x2 = x2_ref[...].astype(jnp.float32)   # (N2, tile)

    if mask_last:
        # Ragged last tile: zero lanes past the real feature dim so they
        # contribute exactly 0 to every moment (no HBM-side padding needed).
        col0 = (pl.program_id(0) * spc + i) * tile
        lane = jax.lax.broadcasted_iota(jnp.int32, (1, tile), 1)
        valid = (col0 + lane) < d_valid
        x1 = jnp.where(valid, x1, 0.0)
        x2 = jnp.where(valid, x2, 0.0)

    # (1, N) rows with 1/N folded in; built once per step, reused per moment.
    ones1 = jnp.full((1, x1.shape[0]), inv_n1, jnp.float32) if use_mxu_1 else None
    ones2 = jnp.full((1, x2.shape[0]), inv_n2, jnp.float32) if use_mxu_2 else None

    mx1 = _colmean(x1, ones1, inv_n1)      # (1, tile)
    mx2 = _colmean(x2, ones2, inv_n2)

    # Moment 0: squared difference of the means (matchnorm term).
    dm = mx1 - mx2
    acc_ref[pl.ds(0, 1), :] = acc_ref[pl.ds(0, 1), :] + _fold_lanes(dm * dm, fold_w)

    # Centered samples and higher central moments k = 2..n_moments via
    # running powers (p *= sx).
    sx1 = x1 - mx1
    sx2 = x2 - mx2
    p1 = sx1
    p2 = sx2
    for m in range(1, n_moments):
        p1 = p1 * sx1                      # p1 == sx1 ** (m + 1)
        p2 = p2 * sx2
        ss1 = _colmean(p1, ones1, inv_n1)
        ss2 = _colmean(p2, ones2, inv_n2)
        dk = ss1 - ss2
        acc_ref[pl.ds(m, 1), :] = (acc_ref[pl.ds(m, 1), :]
                                   + _fold_lanes(dk * dk, fold_w))

    # Mirror the running accumulator into this core's output block (<=1 vreg)
    # every step so correctness never depends on write-back timing.
    o_ref[0] = acc_ref[...]


def cmd(x1, x2, n_moments, *, tile_d=4096, mxu_min_rows=256,
        vmem_budget_bytes=None, vmem_frac=0.7):
    """Pallas CMD forward. x1: (N1, D), x2: (N2, D). Returns scalar f32."""
    assert x1.ndim == 2 and x2.ndim == 2 and x1.shape[1] == x2.shape[1]
    n1, d = x1.shape
    n2, _ = x2.shape
    n_moments = int(n_moments)
    assert n_moments >= 1

    itemsize = max(jnp.dtype(x1.dtype).itemsize, jnp.dtype(x2.dtype).itemsize)
    rows = n1 + n2

    # ---- VMEM budget: 2 inputs x 2 pipeline buffers + ~5 f32 (N, tile) temps.
    try:
        vmem_cap = int(pltpu.get_tpu_info().vmem_capacity_bytes)
        if vmem_cap <= 0:
            raise ValueError
    except Exception:
        vmem_cap = 64 * 1024 * 1024          # v7x per-TC size: safe everywhere
    if vmem_budget_bytes is None:
        vmem_budget_bytes = int(vmem_cap * vmem_frac) - 2 * 1024 * 1024
    per_lane_bytes = 2 * 2 * rows * itemsize + 5 * rows * 4
    budget_tile = max(128, (vmem_budget_bytes // per_lane_bytes) // 128 * 128)

    # ---- Lane tile: multiple of 128 and never larger than D (so the only
    # ragged block is the usual partial edge block, handled by masking).
    if d <= 128:
        tile, fold_w = d, d
    else:
        tile = min(tile_d, budget_tile, (d // 128) * 128)
        tile = max(128, (tile // 128) * 128)
        fold_w = 128
    grid_d = pl.cdiv(d, tile)

    # ---- Split the D tiles across the two TensorCores (v7x) whenever the
    # tile count can be made even, so single-core chips do no extra work.
    n_split = 1
    if grid_d >= 2:
        if grid_d % 2 == 1:
            t2 = max(128, _round_up(pl.cdiv(d, grid_d + 1), 128))
            if t2 <= tile and pl.cdiv(d, t2) % 2 == 0:
                tile = t2
                grid_d = pl.cdiv(d, tile)
        if grid_d % 2 == 0:
            n_split = 2
    spc = grid_d // n_split                  # D steps per core
    mask_last = (grid_d * tile != d)

    footprint = per_lane_bytes * tile + 4 * 1024 * 1024
    vmem_limit = int(min(vmem_cap, max(footprint + 8 * 1024 * 1024,
                                       16 * 1024 * 1024)))

    acc_rows = _round_up(n_moments, 8)

    kernel = functools.partial(
        _cmd_kernel,
        n_moments=n_moments,
        inv_n1=1.0 / n1,
        inv_n2=1.0 / n2,
        use_mxu_1=n1 >= mxu_min_rows,
        use_mxu_2=n2 >= mxu_min_rows,
        tile=tile,
        fold_w=fold_w,
        spc=spc,
        d_valid=d,
        mask_last=mask_last,
    )

    parts = pl.pallas_call(
        kernel,
        out_shape=jax.ShapeDtypeStruct((n_split, acc_rows, fold_w), jnp.float32),
        grid_spec=pltpu.PrefetchScalarGridSpec(
            num_scalar_prefetch=0,
            grid=(n_split, spc),
            in_specs=[
                pl.BlockSpec((n1, tile), lambda c, i: (0, c * spc + i)),
                pl.BlockSpec((n2, tile), lambda c, i: (0, c * spc + i)),
            ],
            out_specs=pl.BlockSpec((1, acc_rows, fold_w),
                                   lambda c, i: (c, 0, 0)),
            scratch_shapes=[pltpu.VMEM((acc_rows, fold_w), jnp.float32)],
        ),
        compiler_params=pltpu.CompilerParams(
            dimension_semantics=("parallel", "arbitrary"),
            vmem_limit_bytes=vmem_limit,
        ),
    )(x1, x2)

    # Tiny epilogue: combine per-core pre-sqrt partials, then sqrt + sum.
    per_moment = jnp.sum(parts[:, :n_moments, :], axis=(0, 2))   # (n_moments,)
    return jnp.sum(jnp.sqrt(per_moment))


def cmd_ref(x1, x2, n_moments):
    """Pure-JAX reference mirroring the PyTorch module."""
    x1 = x1.astype(jnp.float32)
    x2 = x2.astype(jnp.float32)
    mx1 = jnp.mean(x1, axis=0)
    mx2 = jnp.mean(x2, axis=0)
    sx1 = x1 - mx1
    sx2 = x2 - mx2
    scms = jnp.sqrt(jnp.sum((mx1 - mx2) ** 2))
    for i in range(n_moments - 1):
        k = i + 2
        ss1 = jnp.mean(sx1 ** k, axis=0)
        ss2 = jnp.mean(sx2 ** k, axis=0)
        scms = scms + jnp.sqrt(jnp.sum((ss1 - ss2) ** 2))
    return scms


if __name__ == "__main__":
    key = jax.random.PRNGKey(0)
    k1, k2, k3, k4, k5, k6 = jax.random.split(key, 6)
    n_moments = 5

    # Case 1: small (batch, hidden) forward, single full-width tile, no mask.
    x1 = jax.random.normal(k1, (8, 32), dtype=jnp.float32)
    x2 = jax.random.normal(k2, (8, 32), dtype=jnp.float32) * 1.3 + 0.2
    out = jax.block_until_ready(cmd(x1, x2, n_moments))
    ref = jax.block_until_ready(cmd_ref(x1, x2, n_moments))
    assert jnp.allclose(out, ref, rtol=1e-5, atol=1e-5), (out, ref)

    # Case 2: bf16 inputs, unequal batches, 2-way core split + ragged last tile.
    y1 = jax.random.normal(k3, (16, 384), dtype=jnp.float32).astype(jnp.bfloat16)
    y2 = (jax.random.normal(k4, (8, 384), dtype=jnp.float32) * 0.8 - 0.1
          ).astype(jnp.bfloat16)
    out2 = jax.block_until_ready(cmd(y1, y2, n_moments, tile_d=256))
    ref2 = jax.block_until_ready(cmd_ref(y1, y2, n_moments))
    assert jnp.allclose(out2, ref2, rtol=1e-4, atol=1e-4), (out2, ref2)

    # Case 3: D not a multiple of 128 -> in-kernel lane mask, no HBM padding.
    z1 = jax.random.normal(k5, (8, 200), dtype=jnp.float32)
    z2 = jax.random.normal(k6, (8, 200), dtype=jnp.float32) * 0.7 + 0.3
    out3 = jax.block_until_ready(cmd(z1, z2, n_moments))
    ref3 = jax.block_until_ready(cmd_ref(z1, z2, n_moments))
    assert jnp.allclose(out3, ref3, rtol=1e-5, atol=1e-5), (out3, ref3)

    print("KERNEL_OK")
</pallas_src>

<mosaic_0001>
module attributes {stable_mosaic.version = 11 : i64} {
  func.func @_cmd_kernel(%arg0: i32, %arg1: i32, %arg2: memref<8x32xf32, #tpu.memory_space<vmem>>, %arg3: memref<8x32xf32, #tpu.memory_space<vmem>>, %arg4: memref<1x8x32xf32, #tpu.memory_space<vmem>>, %arg5: memref<8x32xf32, #tpu.memory_space<vmem>>) attributes {dimension_semantics = [#tpu.dimension_semantics<parallel>, #tpu.dimension_semantics<arbitrary>], iteration_bounds = array<i64: 1, 1>, scalar_prefetch = 0 : i64, scratch_operands = 1 : i64, tpu.core_type = #tpu.core_type<tc>, window_params = [{transform_indices = @transform_0, window_bounds = array<i64: 8, 32>}, {transform_indices = @transform_1, window_bounds = array<i64: 8, 32>}, {transform_indices = @transform_2, window_bounds = array<i64: 1, 8, 32>}]} {
    %c0_i32 = arith.constant 0 : i32
    %0 = arith.cmpi eq, %arg1, %c0_i32 : i32
    %1 = arith.extui %0 : i1 to i32
    %c0_i32_0 = arith.constant 0 : i32
    %2 = arith.cmpi ne, %1, %c0_i32_0 : i32
    scf.if %2 {
      %cst_44 = arith.constant 0.000000e+00 : f32
      %86 = vector.broadcast %cst_44 : f32 to vector<8x32xf32>
      %c0_45 = arith.constant 0 : index
      %c0_46 = arith.constant 0 : index
      %87 = vector.load %arg5[%c0_45, %c0_46] : memref<8x32xf32, #tpu.memory_space<vmem>>, vector<8x32xf32>
      tpu.vector_store %arg5[%c0_45, %c0_46], %86 {strides = array<i32>} : memref<8x32xf32, #tpu.memory_space<vmem>>, vector<8x32xf32>,
    } else {
    }
    %c0 = arith.constant 0 : index
    %c0_1 = arith.constant 0 : index
    %3 = vector.load %arg2[%c0, %c0_1] : memref<8x32xf32, #tpu.memory_space<vmem>>, vector<8x32xf32>
    %c0_2 = arith.constant 0 : index
    %c0_3 = arith.constant 0 : index
    %4 = vector.load %arg3[%c0_2, %c0_3] : memref<8x32xf32, #tpu.memory_space<vmem>>, vector<8x32xf32>
    %cst = arith.constant dense<0.000000e+00> : vector<32xf32>
    %5 = vector.multi_reduction <add>, %3, %cst [0] : vector<8x32xf32> to vector<32xf32>
    %6 = vector.shape_cast %5 : vector<32xf32> to vector<1x32xf32>
    %cst_4 = arith.constant 1.250000e-01 : f32
    %7 = vector.broadcast %cst_4 : f32 to vector<1x32xf32>
    %8 = arith.mulf %6, %7 : vector<1x32xf32>
    %cst_5 = arith.constant dense<0.000000e+00> : vector<32xf32>
    %9 = vector.multi_reduction <add>, %4, %cst_5 [0] : vector<8x32xf32> to vector<32xf32>
    %10 = vector.shape_cast %9 : vector<32xf32> to vector<1x32xf32>
    %cst_6 = arith.constant 1.250000e-01 : f32
    %11 = vector.broadcast %cst_6 : f32 to vector<1x32xf32>
    %12 = arith.mulf %10, %11 : vector<1x32xf32>
    %13 = arith.subf %8, %12 : vector<1x32xf32>
    %c0_7 = arith.constant 0 : index
    %c0_8 = arith.constant 0 : index
    %14 = vector.load %arg5[%c0_7, %c0_8] : memref<8x32xf32, #tpu.memory_space<vmem>>, vector<1x32xf32>
    %15 = arith.mulf %13, %13 : vector<1x32xf32>
    %16 = arith.addf %14, %15 : vector<1x32xf32>
    %c0_9 = arith.constant 0 : index
    %c0_10 = arith.constant 0 : index
    %17 = vector.load %arg5[%c0_9, %c0_10] : memref<8x32xf32, #tpu.memory_space<vmem>>, vector<1x32xf32>
    tpu.vector_store %arg5[%c0_9, %c0_10], %16 {strides = array<i32>} : memref<8x32xf32, #tpu.memory_space<vmem>>, vector<1x32xf32>,
    %18 = vector.broadcast %8 : vector<1x32xf32> to vector<8x32xf32>
    %19 = arith.subf %3, %18 : vector<8x32xf32>
    %20 = vector.broadcast %12 : vector<1x32xf32> to vector<8x32xf32>
    %21 = arith.subf %4, %20 : vector<8x32xf32>
    %22 = arith.mulf %19, %19 : vector<8x32xf32>
    %23 = arith.mulf %21, %21 : vector<8x32xf32>
    %cst_11 = arith.constant dense<0.000000e+00> : vector<32xf32>
    %24 = vector.multi_reduction <add>, %22, %cst_11 [0] : vector<8x32xf32> to vector<32xf32>
    %25 = vector.shape_cast %24 : vector<32xf32> to vector<1x32xf32>
    %cst_12 = arith.constant 1.250000e-01 : f32
    %26 = vector.broadcast %cst_12 : f32 to vector<1x32xf32>
    %27 = arith.mulf %25, %26 : vector<1x32xf32>
    %cst_13 = arith.constant dense<0.000000e+00> : vector<32xf32>
    %28 = vector.multi_reduction <add>, %23, %cst_13 [0] : vector<8x32xf32> to vector<32xf32>
    %29 = vector.shape_cast %28 : vector<32xf32> to vector<1x32xf32>
    %cst_14 = arith.constant 1.250000e-01 : f32
    %30 = vector.broadcast %cst_14 : f32 to vector<1x32xf32>
    %31 = arith.mulf %29, %30 : vector<1x32xf32>
    %32 = arith.subf %27, %31 : vector<1x32xf32>
    %c1 = arith.constant 1 : index
    %c0_15 = arith.constant 0 : index
    %33 = vector.load %arg5[%c1, %c0_15] : memref<8x32xf32, #tpu.memory_space<vmem>>, vector<1x32xf32>
    %34 = arith.mulf %32, %32 : vector<1x32xf32>
    %35 = arith.addf %33, %34 : vector<1x32xf32>
    %c1_16 = arith.constant 1 : index
    %c0_17 = arith.constant 0 : index
    %36 = vector.load %arg5[%c1_16, %c0_17] : memref<8x32xf32, #tpu.memory_space<vmem>>, vector<1x32xf32>
    tpu.vector_store %arg5[%c1_16, %c0_17], %35 {strides = array<i32>} : memref<8x32xf32, #tpu.memory_space<vmem>>, vector<1x32xf32>,
    %37 = arith.mulf %22, %19 : vector<8x32xf32>
    %38 = arith.mulf %23, %21 : vector<8x32xf32>
    %cst_18 = arith.constant dense<0.000000e+00> : vector<32xf32>
    %39 = vector.multi_reduction <add>, %37, %cst_18 [0] : vector<8x32xf32> to vector<32xf32>
    %40 = vector.shape_cast %39 : vector<32xf32> to vector<1x32xf32>
    %cst_19 = arith.constant 1.250000e-01 : f32
    %41 = vector.broadcast %cst_19 : f32 to vector<1x32xf32>
    %42 = arith.mulf %40, %41 : vector<1x32xf32>
    %cst_20 = arith.constant dense<0.000000e+00> : vector<32xf32>
    %43 = vector.multi_reduction <add>, %38, %cst_20 [0] : vector<8x32xf32> to vector<32xf32>
    %44 = vector.shape_cast %43 : vector<32xf32> to vector<1x32xf32>
    %cst_21 = arith.constant 1.250000e-01 : f32
    %45 = vector.broadcast %cst_21 : f32 to vector<1x32xf32>
    %46 = arith.mulf %44, %45 : vector<1x32xf32>
    %47 = arith.subf %42, %46 : vector<1x32xf32>
    %c2 = arith.constant 2 : index
    %c0_22 = arith.constant 0 : index
    %48 = vector.load %arg5[%c2, %c0_22] : memref<8x32xf32, #tpu.memory_space<vmem>>, vector<1x32xf32>
    %49 = arith.mulf %47, %47 : vector<1x32xf32>
    %50 = arith.addf %48, %49 : vector<1x32xf32>
    %c2_23 = arith.constant 2 : index
    %c0_24 = arith.constant 0 : index
    %51 = vector.load %arg5[%c2_23, %c0_24] : memref<8x32xf32, #tpu.memory_space<vmem>>, vector<1x32xf32>
    tpu.vector_store %arg5[%c2_23, %c0_24], %50 {strides = array<i32>} : memref<8x32xf32, #tpu.memory_space<vmem>>, vector<1x32xf32>,
    %52 = arith.mulf %37, %19 : vector<8x32xf32>
    %53 = arith.mulf %38, %21 : vector<8x32xf32>
    %cst_25 = arith.constant dense<0.000000e+00> : vector<32xf32>
    %54 = vector.multi_reduction <add>, %52, %cst_25 [0] : vector<8x32xf32> to vector<32xf32>
    %55 = vector.shape_cast %54 : vector<32xf32> to vector<1x32xf32>
    %cst_26 = arith.constant 1.250000e-01 : f32
    %56 = vector.broadcast %cst_26 : f32 to vector<1x32xf32>
    %57 = arith.mulf %55, %56 : vector<1x32xf32>
    %cst_27 = arith.constant dense<0.000000e+00> : vector<32xf32>
    %58 = vector.multi_reduction <add>, %53, %cst_27 [0] : vector<8x32xf32> to vector<32xf32>
    %59 = vector.shape_cast %58 : vector<32xf32> to vector<1x32xf32>
    %cst_28 = arith.constant 1.250000e-01 : f32
    %60 = vector.broadcast %cst_28 : f32 to vector<1x32xf32>
    %61 = arith.mulf %59, %60 : vector<1x32xf32>
    %62 = arith.subf %57, %61 : vector<1x32xf32>
    %c3 = arith.constant 3 : index
    %c0_29 = arith.constant 0 : index
    %63 = vector.load %arg5[%c3, %c0_29] : memref<8x32xf32, #tpu.memory_space<vmem>>, vector<1x32xf32>
    %64 = arith.mulf %62, %62 : vector<1x32xf32>
    %65 = arith.addf %63, %64 : vector<1x32xf32>
    %c3_30 = arith.constant 3 : index
    %c0_31 = arith.constant 0 : index
    %66 = vector.load %arg5[%c3_30, %c0_31] : memref<8x32xf32, #tpu.memory_space<vmem>>, vector<1x32xf32>
    tpu.vector_store %arg5[%c3_30, %c0_31], %65 {strides = array<i32>} : memref<8x32xf32, #tpu.memory_space<vmem>>, vector<1x32xf32>,
    %67 = arith.mulf %52, %19 : vector<8x32xf32>
    %68 = arith.mulf %53, %21 : vector<8x32xf32>
    %cst_32 = arith.constant dense<0.000000e+00> : vector<32xf32>
    %69 = vector.multi_reduction <add>, %67, %cst_32 [0] : vector<8x32xf32> to vector<32xf32>
    %70 = vector.shape_cast %69 : vector<32xf32> to vector<1x32xf32>
    %cst_33 = arith.constant 1.250000e-01 : f32
    %71 = vector.broadcast %cst_33 : f32 to vector<1x32xf32>
    %72 = arith.mulf %70, %71 : vector<1x32xf32>
    %cst_34 = arith.constant dense<0.000000e+00> : vector<32xf32>
    %73 = vector.multi_reduction <add>, %68, %cst_34 [0] : vector<8x32xf32> to vector<32xf32>
    %74 = vector.shape_cast %73 : vector<32xf32> to vector<1x32xf32>
    %cst_35 = arith.constant 1.250000e-01 : f32
    %75 = vector.broadcast %cst_35 : f32 to vector<1x32xf32>
    %76 = arith.mulf %74, %75 : vector<1x32xf32>
    %77 = arith.subf %72, %76 : vector<1x32xf32>
    %c4 = arith.constant 4 : index
    %c0_36 = arith.constant 0 : index
    %78 = vector.load %arg5[%c4, %c0_36] : memref<8x32xf32, #tpu.memory_space<vmem>>, vector<1x32xf32>
    %79 = arith.mulf %77, %77 : vector<1x32xf32>
    %80 = arith.addf %78, %79 : vector<1x32xf32>
    %c4_37 = arith.constant 4 : index
    %c0_38 = arith.constant 0 : index
    %81 = vector.load %arg5[%c4_37, %c0_38] : memref<8x32xf32, #tpu.memory_space<vmem>>, vector<1x32xf32>
    tpu.vector_store %arg5[%c4_37, %c0_38], %80 {strides = array<i32>} : memref<8x32xf32, #tpu.memory_space<vmem>>, vector<1x32xf32>,
    %c0_39 = arith.constant 0 : index
    %c0_40 = arith.constant 0 : index
    %82 = vector.load %arg5[%c0_39, %c0_40] : memref<8x32xf32, #tpu.memory_space<vmem>>, vector<8x32xf32>
    %c0_41 = arith.constant 0 : index
    %c0_42 = arith.constant 0 : index
    %c0_43 = arith.constant 0 : index
    %83 = vector.load %arg4[%c0_41, %c0_42, %c0_43] : memref<1x8x32xf32, #tpu.memory_space<vmem>>, vector<1x8x32xf32>
    %84 = vector.shape_cast %83 : vector<1x8x32xf32> to vector<8x32xf32>
    %85 = vector.shape_cast %82 : vector<8x32xf32> to vector<1x8x32xf32>
    tpu.vector_store %arg4[%c0_41, %c0_42, %c0_43], %85 {strides = array<i32>} : memref<1x8x32xf32, #tpu.memory_space<vmem>>, vector<1x8x32xf32>,
    return
  }
  func.func @transform_0(%arg0: i32, %arg1: i32) -> (i32, i32) {
    %c1_i32 = arith.constant 1 : i32
    %0 = arith.muli %arg0, %c1_i32 : i32
    %1 = arith.addi %0, %arg1 : i32
    %c0_i32 = arith.constant 0 : i32
    %c0_i32_0 = arith.constant 0 : i32
    return %c0_i32, %1 : i32, i32
  }
  func.func @transform_1(%arg0: i32, %arg1: i32) -> (i32, i32) {
    %c1_i32 = arith.constant 1 : i32
    %0 = arith.muli %arg0, %c1_i32 : i32
    %1 = arith.addi %0, %arg1 : i32
    %c0_i32 = arith.constant 0 : i32
    %c0_i32_0 = arith.constant 0 : i32
    return %c0_i32, %1 : i32, i32
  }
  func.func @transform_2(%arg0: i32, %arg1: i32) -> (i32, i32, i32) {
    %c0_i32 = arith.constant 0 : i32
    %c0_i32_0 = arith.constant 0 : i32
    %c0_i32_1 = arith.constant 0 : i32
    return %arg0, %c0_i32, %c0_i32_0 : i32, i32, i32
  }
}

</mosaic_0001>

<bundles_post_ra>
// kernel: tpu_custom_call.1
= control target key start
LH: loop header
LB: loop body
LE: loop exit
PB: predicated region body
PF: predicated region fallthrough
CT: control target
= control target key end

     0   :  { %7 = vsyncpa [#allocation4], 0  ;;  %s335_s0 = inlined_call_operand.hbm [shape: f32[8,32], index: 0, kind: input, shape index: {}]   ;;  %s336_s1 = inlined_call_operand.hbm [shape: f32[8,32], index: 1, kind: input, shape index: {}]   ;;  %s337_s2 = inlined_call_operand.hbm [shape: f32[1,8,32], index: 2, kind: output, shape index: {}]  }
   0x1   :  { %8 = vsyncpa [#allocation7], 0 }
   0x2   :  { %9 = vsyncpa [#allocation5], 0  ;;  %s263_s9 = smov [#allocation3]   ;;  %s264_s11 = smov [#allocation6]  }
   0x3   :  { %s19_s10 = sshll.u32 %s263_s9, 4  ;;  %s32_s12 = sshll.u32 %s264_s11, 4  ;;  %s20_s10 = int_to_ptr.vmem [resolvable:$true] %s19_s10  ;;  %s33_s12 = int_to_ptr.vmem [resolvable:$true] %s32_s12 }
   0x4   :  { %s191_s15 = scalar_lea.hbm %s335_s0, 128 }
   0x5   :  { %p192_p0 = scmp.ne.s32.totalorder %s335_s0, %s191_s15  ;;  %p195_p1 = scmp.lt.u32.totalorder %s191_s15, %s335_s0 }
   0x7   :  { %p197_p2 = pnand %p195_p1, %p192_p0 }
   0x9   :  { %200 = shalt.err (!%p197_p2)
}
   0xa   :  { %s201_s20 = scalar_lea.vmem %s20_s10, 128  ;;  %p206_p4 = scmp.lt.s32.totalorder %s20_s10, %s20_s10 }
   0xb   :  { %p202_p3 = scmp.ne.s32.totalorder %s20_s10, %s201_s20  ;;  %p207_p5 = scmp.lt.s32.totalorder %s201_s20, %s201_s20 }
   0xd   :  { %p208_p6 = por %p207_p5, %p206_p4 }
   0xf   :  { %p209_p7 = pnand %p208_p6, %p202_p3 }
  0x11   :  { %212 = shalt.err (!%p209_p7)
}
  0x12   :  { %22 = dma.hbm_to_vmem [thread:$0]  %s335_s0, 128, %s20_s10, [#allocation4]  }
  0x13   :  { %s213_s25 = scalar_lea.hbm %s336_s1, 128 }
  0x14   :  { %p214_p8 = scmp.ne.s32.totalorder %s336_s1, %s213_s25  ;;  %p217_p9 = scmp.lt.u32.totalorder %s213_s25, %s336_s1 }
  0x16   :  { %p219_p10 = pnand %p217_p9, %p214_p8 }
  0x18   :  { %222 = shalt.err (!%p219_p10)
}
  0x19   :  { %s223_s30 = scalar_lea.vmem %s33_s12, 128  ;;  %p228_p12 = scmp.lt.s32.totalorder %s33_s12, %s33_s12 }
  0x1a   :  { %p224_p11 = scmp.ne.s32.totalorder %s33_s12, %s223_s30  ;;  %p229_p13 = scmp.lt.s32.totalorder %s223_s30, %s223_s30 }
  0x1c   :  { %p230_p0 = por %p229_p13, %p228_p12 }
  0x1e   :  { %p231_p1 = pnand %p230_p0, %p224_p11 }
  0x20   :  { %234 = shalt.err (!%p231_p1)
}
  0x21   :  { %35 = dma.hbm_to_vmem [thread:$0]  %s336_s1, 128, %s33_s12, [#allocation7]  }
  0x22   :  { %257 = dma.done.wait [#allocation4], 128  }
  0x23   :  { %258 = vsyncadd [#allocation4], 4294967168 }
  0x24   :  { %259 = dma.done.wait [#allocation7], 128  }
  0x25   :  { %260 = vsyncadd [#allocation7], 4294967168  ;;  %vm48_vm0 = vcmask 261120   ;;  %v265_v0 = vmov 0.0   ;;  %v50_v1 = vld [vmem:[#allocation3] sm:$0xff]  ;;  %v51_v2 = vld [vmem:[#allocation6] sm:$0xff] }
  0x26   :  { %49 = vst.msk [vmem:[#allocation2] sm:$0xff] %vm48_vm0, %v265_v0  ;;  %v53_v3 = vsel %vm48_vm0, %v50_v1, 0.0  ;;  %v61_v4 = vsel %vm48_vm0, %v51_v2, 0.0  ;;  %vm73_vm1 = vcmask 253952   ;;  %s266_s1 = smov [#allocation8]  }
  0x27   :  { %v54_v5 = vrot.slane %v53_v3, 4  ;;  %v62_v6 = vrot.slane %v61_v4, 4  ;;  %s177_s4 = sshll.u32 %s266_s1, 4  ;;  %s178_s4 = int_to_ptr.vmem [resolvable:$true] %s177_s4 }
  0x28   :  { %s235_s5 = scalar_lea.vmem %s178_s4, 128  ;;  %p240_p3 = scmp.lt.s32.totalorder %s178_s4, %s178_s4 }
  0x29   :  { %v55_v7 = vadd.f32 %v54_v5, %v53_v3  ;;  %v63_v8 = vadd.f32 %v62_v6, %v61_v4  ;;  %p236_p2 = scmp.ne.s32.totalorder %s178_s4, %s235_s5  ;;  %p241_p4 = scmp.lt.s32.totalorder %s235_s5, %s235_s5 }
  0x2b   :  { %v56_v9 = vrot.slane %v55_v7, 2  ;;  %v64_v10 = vrot.slane %v63_v8, 2  ;;  %p242_p5 = por %p241_p4, %p240_p3 }
  0x2d   :  { %v57_v11 = vadd.f32 %v56_v9, %v55_v7  ;;  %v65_v12 = vadd.f32 %v64_v10, %v63_v8  ;;  %v70_v22 = vld [vmem:[#allocation2] sm:$0x1]  ;;  %p243_p6 = pnand %p242_p5, %p236_p2 }
  0x2f   :  { %v58_v13 = vrot.slane %v57_v11, 1  ;;  %v66_v14 = vrot.slane %v65_v12, 1 }
  0x31   :  { %v59_v15 = vadd.f32 %v58_v13, %v57_v11  ;;  %v67_v16 = vadd.f32 %v66_v14, %v65_v12 }
  0x33   :  { %v60_v17 = vmul.f32 0.125, %v59_v15  ;;  %v68_v18 = vmul.f32 0.125, %v67_v16 }
  0x35   :  { %v69_v19 = vsub.f32 %v60_v17, %v68_v18  ;;  %v75_v20 = vsub.f32 %v50_v1, %v60_v17  ;;  %v76_v21 = vsub.f32 %v51_v2, %v68_v18 }
  0x37   :  { %v71_v23 = vmul.f32 %v69_v19, %v69_v19  ;;  %v77_v24 = vmul.f32 %v75_v20, %v75_v20  ;;  %v78_v25 = vmul.f32 %v76_v21, %v76_v21 }
  0x39   :  { %v72_v26 = vadd.f32 %v71_v23, %v70_v22  ;;  %v79_v27 = vsel %vm48_vm0, %v77_v24, 0.0  ;;  %v87_v28 = vsel %vm48_vm0, %v78_v25, 0.0  ;;  %v100_v29 = vmul.f32 %v77_v24, %v75_v20  ;;  %v96_v22 = vld [vmem:[#allocation2 + $0x1] sm:$0x1] }
  0x3a   :  { %v80_v30 = vrot.slane %v79_v27, 4  ;;  %v88_v31 = vrot.slane %v87_v28, 4  ;;  %v101_v32 = vmul.f32 %v78_v25, %v76_v21 }
  0x3b   :  { %74 = vst.msk [vmem:[#allocation2] sm:$0x1] %vm73_vm1, %v72_v26  ;;  %v102_v33 = vsel %vm48_vm0, %v100_v29, 0.0  ;;  %v123_v34 = vmul.f32 %v100_v29, %v75_v20 }
  0x3c   :  { %v81_v35 = vadd.f32 %v80_v30, %v79_v27  ;;  %v89_v36 = vadd.f32 %v88_v31, %v87_v28  ;;  %v103_v37 = vrot.slane %v102_v33, 4  ;;  %v110_v38 = vsel %vm48_vm0, %v101_v32, 0.0 }
  0x3d   :  { %v111_v39 = vrot.slane %v110_v38, 4  ;;  %v124_v40 = vmul.f32 %v101_v32, %v76_v21  ;;  %v125_v41 = vsel %vm48_vm0, %v123_v34, 0.0  ;;  %v146_v42 = vmul.f32 %v123_v34, %v75_v20  ;;  %v119_v34 = vld [vmem:[#allocation2 + $0x2] sm:$0x1] }
  0x3e   :  { %v82_v43 = vrot.slane %v81_v35, 2  ;;  %v90_v44 = vrot.slane %v89_v36, 2  ;;  %v104_v45 = vadd.f32 %v103_v37, %v102_v33  ;;  %v126_v46 = vrot.slane %v125_v41, 4 }
  0x3f   :  { %v112_v47 = vadd.f32 %v111_v39, %v110_v38  ;;  %v133_v48 = vsel %vm48_vm0, %v124_v40, 0.0  ;;  %v147_v49 = vmul.f32 %v124_v40, %v76_v21  ;;  %v148_v50 = vsel %vm48_vm0, %v146_v42, 0.0  ;;  %v142_v42 = vld [vmem:[#allocation2 + $0x3] sm:$0x1] }
  0x40   :  { %v83_v51 = vadd.f32 %v82_v43, %v81_v35  ;;  %v91_v52 = vadd.f32 %v90_v44, %v89_v36  ;;  %v105_v53 = vrot.slane %v104_v45, 2  ;;  %v127_v54 = vadd.f32 %v126_v46, %v125_v41 }
  0x41   :  { %v113_v55 = vrot.slane %v112_v47, 2  ;;  %v134_v56 = vrot.slane %v133_v48, 4  ;;  %v149_v57 = vrot.slane %v148_v50, 4  ;;  %v156_v58 = vsel %vm48_vm0, %v147_v49, 0.0 }
  0x42   :  { %v84_v59 = vrot.slane %v83_v51, 1  ;;  %v92_v60 = vrot.slane %v91_v52, 1  ;;  %v106_v61 = vadd.f32 %v105_v53, %v104_v45  ;;  %v128_v62 = vrot.slane %v127_v54, 2  ;;  %v165_v45 = vld [vmem:[#allocation2 + $0x4] sm:$0x1] }
  0x43   :  { %v114_v63 = vadd.f32 %v113_v55, %v112_v47  ;;  %v135_v0 = vadd.f32 %v134_v56, %v133_v48  ;;  %v150_v1 = vadd.f32 %v149_v57, %v148_v50  ;;  %v157_v2 = vrot.slane %v156_v58, 4 }
  0x44   :  { %v85_v3 = vadd.f32 %v84_v59, %v83_v51  ;;  %v93_v4 = vadd.f32 %v92_v60, %v91_v52  ;;  %v107_v5 = vrot.slane %v106_v61, 1  ;;  %v129_v6 = vadd.f32 %v128_v62, %v127_v54 }
  0x45   :  { %v115_v7 = vrot.slane %v114_v63, 1  ;;  %v136_v8 = vrot.slane %v135_v0, 2  ;;  %v151_v9 = vrot.slane %v150_v1, 2  ;;  %v158_v10 = vadd.f32 %v157_v2, %v156_v58 }
  0x46   :  { %v86_v11 = vmul.f32 0.125, %v85_v3  ;;  %v94_v12 = vmul.f32 0.125, %v93_v4  ;;  %v108_v13 = vadd.f32 %v107_v5, %v106_v61  ;;  %v130_v14 = vrot.slane %v129_v6, 1 }
  0x47   :  { %v116_v15 = vadd.f32 %v115_v7, %v114_v63  ;;  %v137_v16 = vadd.f32 %v136_v8, %v135_v0  ;;  %v152_v17 = vadd.f32 %v151_v9, %v150_v1  ;;  %v159_v18 = vrot.slane %v158_v10, 2 }
  0x48   :  { %v95_v19 = vsub.f32 %v86_v11, %v94_v12  ;;  %v109_v20 = vmul.f32 0.125, %v108_v13  ;;  %v131_v21 = vadd.f32 %v130_v14, %v129_v6 }
  0x49   :  { %v117_v23 = vmul.f32 0.125, %v116_v15  ;;  %v138_v24 = vrot.slane %v137_v16, 1  ;;  %v153_v25 = vrot.slane %v152_v17, 1  ;;  %v160_v26 = vadd.f32 %v159_v18, %v158_v10 }
  0x4a   :  { %v97_v27 = vmul.f32 %v95_v19, %v95_v19  ;;  %v132_v28 = vmul.f32 0.125, %v131_v21 }
  0x4b   :  { %v118_v29 = vsub.f32 %v109_v20, %v117_v23  ;;  %v139_v30 = vadd.f32 %v138_v24, %v137_v16  ;;  %v154_v31 = vadd.f32 %v153_v25, %v152_v17  ;;  %v161_v32 = vrot.slane %v160_v26, 1 }
  0x4c   :  { %v98_v33 = vadd.f32 %v97_v27, %v96_v22 }
  0x4d   :  { %v120_v35 = vmul.f32 %v118_v29, %v118_v29  ;;  %v140_v36 = vmul.f32 0.125, %v139_v30  ;;  %v155_v37 = vmul.f32 0.125, %v154_v31  ;;  %v162_v38 = vadd.f32 %v161_v32, %v160_v26 }
  0x4e   :  { %99 = vst.msk [vmem:[#allocation2 + $0x1] sm:$0x1] %vm73_vm1, %v98_v33 }
  0x4f   :  { %v121_v39 = vadd.f32 %v120_v35, %v119_v34  ;;  %v141_v40 = vsub.f32 %v132_v28, %v140_v36  ;;  %v163_v41 = vmul.f32 0.125, %v162_v38 }
  0x51   :  { %122 = vst.msk [vmem:[#allocation2 + $0x2] sm:$0x1] %vm73_vm1, %v121_v39  ;;  %v143_v43 = vmul.f32 %v141_v40, %v141_v40  ;;  %v164_v44 = vsub.f32 %v155_v37, %v163_v41 }
  0x53   :  { %v144_v46 = vadd.f32 %v143_v43, %v142_v42  ;;  %v166_v47 = vmul.f32 %v164_v44, %v164_v44 }
  0x55   :  { %145 = vst.msk [vmem:[#allocation2 + $0x3] sm:$0x1] %vm73_vm1, %v144_v46  ;;  %v167_v48 = vadd.f32 %v166_v47, %v165_v45 }
  0x57   :  { %168 = vst.msk [vmem:[#allocation2 + $0x4] sm:$0x1] %vm73_vm1, %v167_v48 }
  0x5e   :  { %v169_v49 = vld [vmem:[#allocation2] sm:$0xff] }
  0x5f   :  { %170 = vst.msk [vmem:[#allocation8] sm:$0xff] %vm48_vm0, %v169_v49 }
  0x60   :  { %246 = shalt.err (!%p243_p6)
}
  0x61   :  { %s247_s8 = scalar_lea.hbm %s337_s2, 128 }
  0x62   :  { %p248_p7 = scmp.ne.s32.totalorder %s337_s2, %s247_s8  ;;  %p251_p8 = scmp.lt.u32.totalorder %s247_s8, %s337_s2 }
  0x64   :  { %p253_p9 = pnand %p251_p8, %p248_p7 }
  0x66   :  { %256 = shalt.err (!%p253_p9)
}
  0x67   :  { %180 = dma.vmem_to_hbm [thread:$0]  %s178_s4, 128, %s337_s2, [#allocation5]  }
  0x68   :  { %261 = dma.done.wait [#allocation5], 128  }
  0x69   :  { %262 = vsyncadd [#allocation5], 4294967168 }
  0x6a   :  { %184 = vsyncpa [#allocation4], 1 }
  0x6b   :  { %185 = vsyncpa [#allocation7], 1 }
  0x6c   :  { %186 = vsyncpa [#allocation5], 1 }

</bundles_post_ra>
